<compile_context>
chip_gen: v5e
topology: v5e:2x2
jax: 0.10.0
libtpu: 0.0.40
codegen_flags: <defaults>
</compile_context>

<pallas_src>
import math

import jax
import jax.numpy as jnp
from jax import lax
from jax.experimental import pallas as pl
from jax.experimental.pallas import tpu as pltpu


def _round_up(x: int, m: int) -> int:
    return ((x + m - 1) // m) * m


def _cdiv(a: int, b: int) -> int:
    return (a + b - 1) // b


def _make_kernel(m_real: int, m_pad: int, inv_sqrt_d: float):
    """Kernel over one (TN, D_pad) text tile; attr tile (M_pad, D_pad) is VMEM-resident."""
    needs_mask = m_pad != m_real
    # NOTE: inv_sqrt_d must stay a plain Python float; a jnp scalar here would be a
    # captured constant and pallas_call rejects kernels that capture constants.

    def kernel(text_ref, attr_ref, simi_ref, out_ref):
        t = text_ref[...]          # (TN, Dp) in input dtype (f32 or bf16)
        a = attr_ref[...]          # (Mp, Dp) in input dtype

        # Fold 1/sqrt(D) into the query tile (TN x Dp) instead of scaling the
        # (TN x Mp) score slab. Weak-typed python float: dtype is preserved.
        tq = t * inv_sqrt_d

        # scores = tq @ a.T: contract on D of both operands (no a.T materialization).
        scores = lax.dot_general(
            tq, a,
            dimension_numbers=(((1,), (1,)), ((), ())),
            preferred_element_type=jnp.float32,
        )                          # (TN, Mp) f32

        if needs_mask:
            # Padded attribute columns must not participate in the softmax.
            col = lax.broadcasted_iota(jnp.int32, scores.shape, 1)
            scores = jnp.where(col < m_real, scores, float("-inf"))

        # Numerically-stable softmax, with the normalization deferred past the
        # PV matmul so the divide happens on the (TN, Dp) slab.
        m = jnp.max(scores, axis=-1, keepdims=True)
        e = jnp.exp(scores - m)                            # (TN, Mp) f32
        denom = jnp.sum(e, axis=-1, keepdims=True)         # (TN, 1)  f32

        # (e @ attr) with f32 accumulation; MXU fed in the operand dtype.
        eo = jnp.dot(e.astype(a.dtype), a,
                     preferred_element_type=jnp.float32)   # (TN, Dp) f32
        attn_out = eo / denom                              # exact normalization

        # Residual.
        text_new = attn_out + t.astype(jnp.float32)        # (TN, Dp) f32

        # Store text' and compute simi from the SAME stored value so that the two
        # returned tensors are exactly consistent: simi == text'_returned @ attr.T.
        out_val = text_new.astype(out_ref.dtype)
        out_ref[...] = out_val

        simi = lax.dot_general(
            out_val, a,
            dimension_numbers=(((1,), (1,)), ((), ())),
            preferred_element_type=jnp.float32,
        )                                                  # (TN, Mp) f32
        simi_ref[...] = simi.astype(simi_ref.dtype)

    return kernel


def text_to_attribute_transformer(text_features, attribute_features, *, tn: int = 512):
    """text_features: (N, D), attribute_features: (M, D) -> ((N, M), (N, D))."""
    N, D = text_features.shape
    M, D2 = attribute_features.shape
    assert D == D2, "hidden dims must match"

    in_dtype = text_features.dtype
    out_dtype = in_dtype                       # match PyTorch; halves writeback for bf16
    itemsize = jnp.dtype(in_dtype).itemsize
    out_itemsize = jnp.dtype(out_dtype).itemsize

    # dtype-native sublane count: f32 -> 8, bf16 -> 16, int8/fp8 -> 32.
    sub = max(8, 32 // itemsize)

    # Lane-dense last dims.
    D_pad = _round_up(D, 128)
    M_pad = _round_up(M, 128)

    # --- Balanced N tiling ---------------------------------------------------
    num_tiles = _cdiv(N, tn)
    if num_tiles == 1 and N >= 2 * sub:
        num_tiles = 2                           # keep both v7x TensorCores busy
    tile_n = _round_up(_cdiv(N, num_tiles), sub)

    def vmem_bytes(tn_: int) -> int:
        text_b = 2 * tn_ * D_pad * itemsize           # double-buffered text tile
        attr_b = 2 * M_pad * D_pad * itemsize         # attr tile (2 pipeline buffers)
        simi_b = 2 * tn_ * M_pad * out_itemsize       # double-buffered simi tile
        out_b = 2 * tn_ * D_pad * out_itemsize        # double-buffered text' tile
        interm = 3 * tn_ * M_pad * 4 + 3 * tn_ * D_pad * 4   # f32 softmax intermediates
        return text_b + attr_b + simi_b + out_b + interm

    VMEM_BUDGET = 48 * 1024 * 1024              # headroom under v7x's 64 MiB physical VMEM
    while vmem_bytes(tile_n) > VMEM_BUDGET and tile_n > sub:
        num_tiles = _cdiv(N, max(sub, tile_n // 2))
        tile_n = _round_up(_cdiv(N, num_tiles), sub)

    TN = tile_n
    N_pad = num_tiles * TN

    t = jnp.pad(text_features, ((0, N_pad - N), (0, D_pad - D)))
    a = jnp.pad(attribute_features, ((0, M_pad - M), (0, D_pad - D)))

    grid = (num_tiles,)

    vmem_limit = int(min(max(vmem_bytes(TN) * 1.25, 32 * 1024 * 1024), 56 * 1024 * 1024))

    cost = pl.CostEstimate(
        flops=6 * N_pad * M_pad * D_pad,          # 3 matmuls x 2*N*M*D
        transcendentals=N_pad * M_pad,            # exp in softmax
        bytes_accessed=(N_pad * D_pad + M_pad * D_pad) * itemsize
        + (N_pad * M_pad + N_pad * D_pad) * out_itemsize,
    )

    kernel = _make_kernel(M, M_pad, 1.0 / math.sqrt(D))

    simi_p, out_p = pl.pallas_call(
        kernel,
        out_shape=(
            jax.ShapeDtypeStruct((N_pad, M_pad), out_dtype),
            jax.ShapeDtypeStruct((N_pad, D_pad), out_dtype),
        ),
        grid=grid,
        in_specs=[
            pl.BlockSpec((TN, D_pad), lambda i: (i, 0)),      # text tile, walks N
            pl.BlockSpec((M_pad, D_pad), lambda i: (0, 0)),   # attr tile, VMEM-resident
        ],
        out_specs=(
            pl.BlockSpec((TN, M_pad), lambda i: (i, 0)),      # simi tile
            pl.BlockSpec((TN, D_pad), lambda i: (i, 0)),      # text' tile
        ),
        compiler_params=pltpu.CompilerParams(
            dimension_semantics=("parallel",),                # megacore-shardable on v7x
            vmem_limit_bytes=vmem_limit,
        ),
        cost_estimate=cost,
    )(t, a)

    return simi_p[:N, :M], out_p[:N, :D]


def _reference(text_features, attribute_features):
    d = text_features.shape[-1]
    scores = (text_features @ attribute_features.T) / jnp.sqrt(jnp.float32(d))
    attn = jax.nn.softmax(scores, axis=-1)
    out = attn @ attribute_features + text_features
    simi = out @ attribute_features.T
    return simi, out


if __name__ == "__main__":
    key = jax.random.PRNGKey(0)
    k1, k2 = jax.random.split(key)

    N, D, M = 8, 32, 16  # seq=8, hidden=32, 16 attribute rows
    text = jax.random.normal(k1, (N, D), dtype=jnp.float32)
    attr = jax.random.normal(k2, (M, D), dtype=jnp.float32)

    simi, text_new = text_to_attribute_transformer(text, attr)
    simi = jax.block_until_ready(simi)
    text_new = jax.block_until_ready(text_new)

    ref_simi, ref_text_new = _reference(text, attr)
    assert jnp.allclose(simi, ref_simi, atol=1e-3, rtol=1e-3), (
        float(jnp.max(jnp.abs(simi - ref_simi))))
    assert jnp.allclose(text_new, ref_text_new, atol=1e-3, rtol=1e-3), (
        float(jnp.max(jnp.abs(text_new - ref_text_new))))

    print("KERNEL_OK")
</pallas_src>

<mosaic_0001>
module attributes {stable_mosaic.version = 11 : i64} {
  func.func @kernel(%arg0: i32, %arg1: memref<8x128xf32, #tpu.memory_space<vmem>>, %arg2: memref<128x128xf32, #tpu.memory_space<vmem>>, %arg3: memref<8x128xf32, #tpu.memory_space<vmem>>, %arg4: memref<8x128xf32, #tpu.memory_space<vmem>>) attributes {dimension_semantics = [#tpu.dimension_semantics<parallel>], iteration_bounds = array<i64: 1>, scalar_prefetch = 0 : i64, scratch_operands = 0 : i64, tpu.core_type = #tpu.core_type<tc>, window_params = [{transform_indices = @transform_0, window_bounds = array<i64: 8, 128>}, {pipeline_mode = #tpu.pipeline_mode<synchronous>, transform_indices = @transform_1, window_bounds = array<i64: 128, 128>}, {transform_indices = @transform_2, window_bounds = array<i64: 8, 128>}, {transform_indices = @transform_3, window_bounds = array<i64: 8, 128>}]} {
    %c0 = arith.constant 0 : index
    %c0_0 = arith.constant 0 : index
    %0 = vector.load %arg1[%c0, %c0_0] : memref<8x128xf32, #tpu.memory_space<vmem>>, vector<8x128xf32>
    %c0_1 = arith.constant 0 : index
    %c0_2 = arith.constant 0 : index
    %1 = vector.load %arg2[%c0_1, %c0_2] : memref<128x128xf32, #tpu.memory_space<vmem>>, vector<128x128xf32>
    %cst = arith.constant 0.176776692 : f32
    %2 = vector.broadcast %cst : f32 to vector<8x128xf32>
    %3 = arith.mulf %0, %2 : vector<8x128xf32>
    %cst_3 = arith.constant dense<0.000000e+00> : vector<8x128xf32>
    %4 = tpu.matmul %3, %1, %cst_3 {dimension_numbers = #tpu.dot_dimension_numbers<[1], [1], [0], [0], [0, 0, 1, 0], [], []>} : vector<8x128xf32>, vector<128x128xf32>, vector<8x128xf32> -> vector<8x128xf32>
    %5 = tpu.iota {dimensions = array<i32: 1>} : vector<8x128xi32>
    %c16_i32 = arith.constant 16 : i32
    %6 = vector.broadcast %c16_i32 : i32 to vector<8x128xi32>
    %7 = arith.cmpi slt, %5, %6 : vector<8x128xi32>
    %cst_4 = arith.constant 0xFF800000 : f32
    %8 = vector.broadcast %cst_4 : f32 to vector<8x128xf32>
    %9 = arith.select %7, %4, %8 : vector<8x128xi1>, vector<8x128xf32>
    %cst_5 = arith.constant dense<0xFF800000> : vector<8xf32>
    %10 = vector.multi_reduction <maximumf>, %9, %cst_5 [1] : vector<8x128xf32> to vector<8xf32>
    %11 = vector.shape_cast %10 : vector<8xf32> to vector<8x1xf32>
    %12 = vector.broadcast %11 : vector<8x1xf32> to vector<8x128xf32>
    %13 = arith.subf %9, %12 : vector<8x128xf32>
    %14 = math.exp %13 : vector<8x128xf32>
    %cst_6 = arith.constant dense<0.000000e+00> : vector<8xf32>
    %15 = vector.multi_reduction <add>, %14, %cst_6 [1] : vector<8x128xf32> to vector<8xf32>
    %16 = vector.shape_cast %15 : vector<8xf32> to vector<8x1xf32>
    %cst_7 = arith.constant dense<0.000000e+00> : vector<8x128xf32>
    %17 = tpu.matmul %14, %1, %cst_7 {dimension_numbers = #tpu.dot_dimension_numbers<[1], [0], [0], [1], [0, 0, 1, 1], [], []>} : vector<8x128xf32>, vector<128x128xf32>, vector<8x128xf32> -> vector<8x128xf32>
    %18 = vector.broadcast %16 : vector<8x1xf32> to vector<8x128xf32>
    %19 = arith.divf %17, %18 : vector<8x128xf32>
    %20 = arith.addf %19, %0 : vector<8x128xf32>
    %c0_8 = arith.constant 0 : index
    %c0_9 = arith.constant 0 : index
    %21 = vector.load %arg4[%c0_8, %c0_9] : memref<8x128xf32, #tpu.memory_space<vmem>>, vector<8x128xf32>
    tpu.vector_store %arg4[%c0_8, %c0_9], %20 {strides = array<i32>} : memref<8x128xf32, #tpu.memory_space<vmem>>, vector<8x128xf32>,
    %cst_10 = arith.constant dense<0.000000e+00> : vector<8x128xf32>
    %22 = tpu.matmul %20, %1, %cst_10 {dimension_numbers = #tpu.dot_dimension_numbers<[1], [1], [0], [0], [0, 0, 1, 0], [], []>} : vector<8x128xf32>, vector<128x128xf32>, vector<8x128xf32> -> vector<8x128xf32>
    %c0_11 = arith.constant 0 : index
    %c0_12 = arith.constant 0 : index
    %23 = vector.load %arg3[%c0_11, %c0_12] : memref<8x128xf32, #tpu.memory_space<vmem>>, vector<8x128xf32>
    tpu.vector_store %arg3[%c0_11, %c0_12], %22 {strides = array<i32>} : memref<8x128xf32, #tpu.memory_space<vmem>>, vector<8x128xf32>,
    return
  }
  func.func @transform_0(%arg0: i32) -> (i32, i32) {
    %c0_i32 = arith.constant 0 : i32
    %c0_i32_0 = arith.constant 0 : i32
    return %arg0, %c0_i32 : i32, i32
  }
  func.func @transform_1(%arg0: i32) -> (i32, i32) {
    %c0_i32 = arith.constant 0 : i32
    %c0_i32_0 = arith.constant 0 : i32
    %c0_i32_1 = arith.constant 0 : i32
    return %c0_i32, %c0_i32_0 : i32, i32
  }
  func.func @transform_2(%arg0: i32) -> (i32, i32) {
    %c0_i32 = arith.constant 0 : i32
    %c0_i32_0 = arith.constant 0 : i32
    return %arg0, %c0_i32 : i32, i32
  }
  func.func @transform_3(%arg0: i32) -> (i32, i32) {
    %c0_i32 = arith.constant 0 : i32
    %c0_i32_0 = arith.constant 0 : i32
    return %arg0, %c0_i32 : i32, i32
  }
}

</mosaic_0001>

<bundles_post_ra>
// kernel: tpu_custom_call.1
= control target key start
LH: loop header
LB: loop body
LE: loop exit
PB: predicated region body
PF: predicated region fallthrough
CT: control target
= control target key end

     0   :  { %9 = vsyncpa [#allocation3], 0  ;;  %s338_s0 = inlined_call_operand.hbm [shape: f32[8,128], index: 0, kind: input, shape index: {}]   ;;  %s339_s1 = inlined_call_operand.hbm [shape: f32[128,128], index: 1, kind: input, shape index: {}]   ;;  %s340_s2 = inlined_call_operand.hbm [shape: f32[8,128], index: 2, kind: output, shape index: {0}]   ;;  %s341_s3 = inlined_call_operand.hbm [shape: f32[8,128], index: 3, kind: output, shape index: {1}]  }
   0x1   :  { %10 = vsyncpa [#allocation6], 0 }
   0x2   :  { %11 = vsyncpa [#allocation4], 0 }
   0x3   :  { %12 = vsyncpa [#allocation9], 0  ;;  %s18_s14 = sshll.u32 %s338_s0, 4  ;;  %s300_s15 = smov [#allocation2]   ;;  %s19_s14 = int_to_ptr.hbm [resolvable:$true] %s18_s14 }
   0x4   :  { %s20_s16 = sshll.u32 %s300_s15, 4  ;;  %s28_s19 = sshll.u32 %s339_s1, 4  ;;  %s21_s16 = int_to_ptr.vmem [resolvable:$true] %s20_s16  ;;  %s29_s19 = int_to_ptr.hbm [resolvable:$true] %s28_s19 }
   0x5   :  { %23 = dma.hbm_to_vmem [thread:$0]  %s19_s14, 128, %s21_s16, [#allocation3]  }
   0x6   :  { %s301_s20 = smov [#allocation5]   ;;  %s302_s22 = smov 128  }
   0x7   :  { %s30_s21 = sshll.u32 %s301_s20, 4  ;;  %s303_s23 = smov 8   ;;  %s31_s21 = int_to_ptr.vmem [resolvable:$true] %s30_s21 }
   0x8   :  { %36 = dma.hbm_to_vmem [thread:$0]  %s29_s19, 2048, %s31_s21, [#allocation6], %s302_s22, %s302_s22, %s303_s23  }
   0x9   :  { %292 = dma.done.wait [#allocation3], 128  }
   0xa   :  { %293 = vsyncadd [#allocation3], 4294967168 }
   0xb   :  { %294 = dma.done.wait [#allocation6], 2048  }
   0xc   :  { %295 = vsyncadd [#allocation6], 4294965248  ;;  %v61_v0 = vld [vmem:[#allocation5 + $0x78] sm:$0xff]  ;;  %v60_v1 = vld [vmem:[#allocation5 + $0x70] sm:$0xff]  ;;  %v83_v18 = vlaneseq  ;;  %s304_s0 = smov [#allocation8]   ;;  %s170_s26 = sshll.u32 %s341_s3, 4  ;;  %s171_s26 = int_to_ptr.hbm [resolvable:$true] %s170_s26 }
   0xd   :  { %63 = vmatpush.xpose.msra.mxu0 %v61_v0  ;;  %94 = vmatpush.msra.mxu1 %v61_v0  ;;  %v59_v2 = vld [vmem:[#allocation5 + $0x68] sm:$0xff]  ;;  %v58_v3 = vld [vmem:[#allocation5 + $0x60] sm:$0xff]  ;;  %v57_v4 = vld [vmem:[#allocation5 + $0x58] sm:$0xff]  ;;  %s168_s1 = sshll.u32 %s304_s0, 4  ;;  %s305_s27 = smov [#allocation7]   ;;  %s169_s1 = int_to_ptr.vmem [resolvable:$true] %s168_s1 }
   0xe   :  { %131 = vmatpush.xpose.msra.mxu2 %v61_v0  ;;  %v56_v5 = vld [vmem:[#allocation5 + $0x50] sm:$0xff]  ;;  %v55_v6 = vld [vmem:[#allocation5 + $0x48] sm:$0xff]  ;;  %v54_v7 = vld [vmem:[#allocation5 + $0x40] sm:$0xff]  ;;  %v84_v19 = vand.u32 127, %v83_v18  ;;  %s157_s28 = sshll.u32 %s305_s27, 4  ;;  %s159_s4 = sshll.u32 %s340_s2, 4  ;;  %s158_s28 = int_to_ptr.vmem [resolvable:$true] %s157_s28  ;;  %s160_s4 = int_to_ptr.hbm [resolvable:$true] %s159_s4 }
   0xf   :  { %95 = vmatpush.msra.mxu1 %v60_v1  ;;  %v53_v8 = vld [vmem:[#allocation5 + $0x38] sm:$0xff]  ;;  %v52_v9 = vld [vmem:[#allocation5 + $0x30] sm:$0xff]  ;;  %v51_v10 = vld [vmem:[#allocation5 + $0x28] sm:$0xff] }
  0x10   :  { %v50_v11 = vld [vmem:[#allocation5 + $0x20] sm:$0xff]  ;;  %v49_v12 = vld [vmem:[#allocation5 + $0x18] sm:$0xff]  ;;  %v48_v13 = vld [vmem:[#allocation5 + $0x10] sm:$0xff]  ;;  %vm85_vm0 = vcmp.lt.s32.totalorder %v84_v19, 16 }
  0x11   :  { %64 = vmatpush.xpose.msra.mxu0 %v60_v1  ;;  %96 = vmatpush.msra.mxu1 %v59_v2  ;;  %v47_v14 = vld [vmem:[#allocation5 + $0x8] sm:$0xff]  ;;  %v46_v15 = vld [vmem:[#allocation5] sm:$0xff]  ;;  %v45_v16 = vld [vmem:[#allocation2] sm:$0xff] }
  0x12   :  { %132 = vmatpush.xpose.msra.mxu2 %v60_v1  ;;  %v62_v17 = vmul.f32 0.17677669, %v45_v16 }
  0x13   :  { %97 = vmatpush.msra.mxu1 %v58_v3 }
  0x15   :  { %65 = vmatpush.xpose.msra.mxu0 %v59_v2  ;;  %98 = vmatpush.msra.mxu1 %v57_v4 }
  0x16   :  { %133 = vmatpush.xpose.msra.mxu2 %v59_v2 }
  0x17   :  { %99 = vmatpush.msra.mxu1 %v56_v5 }
  0x19   :  { %66 = vmatpush.xpose.msra.mxu0 %v58_v3  ;;  %100 = vmatpush.msra.mxu1 %v55_v6 }
  0x1a   :  { %134 = vmatpush.xpose.msra.mxu2 %v58_v3 }
  0x1b   :  { %101 = vmatpush.msra.mxu1 %v54_v7 }
  0x1d   :  { %67 = vmatpush.xpose.msra.mxu0 %v57_v4  ;;  %102 = vmatpush.msra.mxu1 %v53_v8 }
  0x1e   :  { %135 = vmatpush.xpose.msra.mxu2 %v57_v4 }
  0x1f   :  { %103 = vmatpush.msra.mxu1 %v52_v9 }
  0x21   :  { %68 = vmatpush.xpose.msra.mxu0 %v56_v5  ;;  %104 = vmatpush.msra.mxu1 %v51_v10 }
  0x22   :  { %136 = vmatpush.xpose.msra.mxu2 %v56_v5 }
  0x23   :  { %105 = vmatpush.msra.mxu1 %v50_v11 }
  0x25   :  { %69 = vmatpush.xpose.msra.mxu0 %v55_v6  ;;  %106 = vmatpush.msra.mxu1 %v49_v12 }
  0x26   :  { %137 = vmatpush.xpose.msra.mxu2 %v55_v6 }
  0x27   :  { %107 = vmatpush.msra.mxu1 %v48_v13 }
  0x29   :  { %70 = vmatpush.xpose.msra.mxu0 %v54_v7  ;;  %108 = vmatpush.msra.mxu1 %v47_v14 }
  0x2a   :  { %138 = vmatpush.xpose.msra.mxu2 %v54_v7 }
  0x2b   :  { %109 = vmatpush.msra.mxu1 %v46_v15 }
  0x2d   :  { %71 = vmatpush.xpose.msra.mxu0 %v53_v8 }
  0x2e   :  { %139 = vmatpush.xpose.msra.mxu2 %v53_v8 }
  0x31   :  { %72 = vmatpush.xpose.msra.mxu0 %v52_v9 }
  0x32   :  { %140 = vmatpush.xpose.msra.mxu2 %v52_v9 }
  0x35   :  { %73 = vmatpush.xpose.msra.mxu0 %v51_v10 }
  0x36   :  { %141 = vmatpush.xpose.msra.mxu2 %v51_v10 }
  0x39   :  { %74 = vmatpush.xpose.msra.mxu0 %v50_v11 }
  0x3a   :  { %142 = vmatpush.xpose.msra.mxu2 %v50_v11 }
  0x3d   :  { %75 = vmatpush.xpose.msra.mxu0 %v49_v12 }
  0x3e   :  { %143 = vmatpush.xpose.msra.mxu2 %v49_v12 }
  0x41   :  { %76 = vmatpush.xpose.msra.mxu0 %v48_v13 }
  0x42   :  { %144 = vmatpush.xpose.msra.mxu2 %v48_v13 }
  0x45   :  { %77 = vmatpush.xpose.msra.mxu0 %v47_v14 }
  0x46   :  { %145 = vmatpush.xpose.msra.mxu2 %v47_v14 }
  0x49   :  { %78 = vmatpush.xpose.msra.mxu0 %v46_v15 }
  0x4a   :  { %146 = vmatpush.xpose.msra.mxu2 %v46_v15 }
  0x4c   :  { %79 = vmatmul.f32.vlgmr.msra.gmra.mxu0 %v62_v17 }
  0xc9   :  { %v80_v20 = vpop.f32.mrf.mxu0 }
  0xca   :  { %v86_v21 = vsel %vm85_vm0, %v80_v20, -inf }
  0xcb   :  { %87 = vmax.xlane.f32.xlu0 %v86_v21 }
 0x13e   :  { %v88_v22 = vpop.xlane.xlu0 %87 }
 0x13f   :  { %v89_v23 = vsub.f32 %v86_v21, %v88_v22 }
 0x141   :  { %v90_v24 = vmul.f32 1.442695, %v89_v23 }
 0x143   :  { %192 = vpow2.f32 %v90_v24 }
 0x149   :  { %v193_v25 = vpop.eup %192 }
 0x14a   :  { %92 = vadd.xlane.f32.xlu0 %v193_v25  ;;  %110 = vmatmul.f32.vlgmr.msra.gmra.mxu1 %v193_v25 }
 0x1bd   :  { %v93_v26 = vpop.xlane.xlu0 %92 }
 0x1be   :  { %194 = vrcp.f32 %v93_v26  ;;  %v125_v30 = vand.u32 2147483648, %v93_v26  ;;  %v123_v32 = vand.u32 2147483647, %v93_v26  ;;  %vm119_vm2 = vweird.f32 %v93_v26 }
 0x1c0   :  { %v126_v34 = vor.u32 1.1754944e-38, %v125_v30  ;;  %vm124_vm4 = vcmp.eq.f32.partialorder %v123_v32, 8.507059e+37 }
 0x1c4   :  { %v195_v27 = vpop.eup %194 }
 0x1c5   :  { %v115_v28 = vmul.f32 %v195_v27, %v93_v26  ;;  %vm120_vm1 = vweird.f32 %v195_v27 }
 0x1c6   :  { %vm121_vm3 = vmor %vm119_vm2, %vm120_vm1 }
 0x1c7   :  { %v116_v29 = vsub.f32 1.0, %v115_v28  ;;  %v111_v36 = vpop.f32.mrf.mxu1 }
 0x1c9   :  { %v117_v31 = vmul.f32 %v195_v27, %v116_v29 }
 0x1cb   :  { %v118_v33 = vadd.f32 %v195_v27, %v117_v31 }
 0x1cd   :  { %v122_v35 = vsel %vm121_vm3, %v195_v27, %v118_v33 }
 0x1ce   :  { %v127_v37 = vsel %vm124_vm4, %v126_v34, %v122_v35 }
 0x1cf   :  { %v128_v38 = vmul.f32 %v127_v37, %v111_v36 }
 0x1d1   :  { %v129_v39 = vadd.f32 %v128_v38, %v45_v16 }
 0x1d3   :  { %147 = vmatmul.f32.vlgmr.msra.gmra.mxu2 %v129_v39  ;;  %130 = vst [vmem:[#allocation8] sm:$0xff] %v129_v39 }
 0x1d4   :  { %173 = dma.vmem_to_hbm [thread:$0]  %s169_s1, 128, %s171_s26, [#allocation9]  }
 0x256   :  { %v148_v40 = vpop.f32.mrf.mxu2 }
 0x257   :  { %151 = vst [vmem:[#allocation7] sm:$0xff] %v148_v40 }
 0x258   :  { %162 = dma.vmem_to_hbm [thread:$0]  %s158_s28, 128, %s160_s4, [#allocation4]  }
 0x259   :  { %296 = dma.done.wait [#allocation4], 128  }
 0x25a   :  { %297 = vsyncadd [#allocation4], 4294967168 }
 0x25b   :  { %298 = dma.done.wait [#allocation9], 128  }
 0x25c   :  { %299 = vsyncadd [#allocation9], 4294967168 }
 0x25d   :  { %182 = vsyncpa [#allocation3], 1 }
 0x25e   :  { %183 = vsyncpa [#allocation6], 1 }
 0x25f   :  { %184 = vsyncpa [#allocation4], 1 }
 0x260   :  { %185 = vsyncpa [#allocation9], 1 }

</bundles_post_ra>
